<compile_context>
chip_gen: v6e
topology: v6e:2x2x1
jax: 0.10.0
libtpu: 0.0.40
codegen_flags: <defaults>
</compile_context>

<pallas_src>
import numpy as np
import jax
import jax.numpy as jnp
from jax.experimental import pallas as pl
from jax.experimental.pallas import tpu as pltpu

_LANE = 128


def _round_up(x, m):
    return ((x + m - 1) // m) * m


def _vmem_budget_bytes():
    """~Half of physical VMEM (32 MiB on v7x, 64 MiB on v5e/v6e)."""
    try:
        phys = int(getattr(pltpu.get_tpu_info(), "vmem_capacity_bytes", 0) or 0)
    except Exception:
        phys = 0
    if phys <= 0:
        phys = 64 * 1024 * 1024          # conservative default = v7x per-core VMEM
    return max(32 * 1024 * 1024, min(phys // 2, 96 * 1024 * 1024))


# ------------------------------- Pallas kernel -------------------------------

def _build_kernel(scale_meta, stride, tho, wo, c4, n_row_tiles):
    """(x_s2d block, per-scale weight slabs, bias row) -> (tho, wo, Cp) output block."""
    n_scales = len(scale_meta)

    def kernel(x_ref, *refs):
        w_refs = refs[:n_scales]
        b_ref = refs[n_scales]
        o_ref = refs[n_scales + 1]

        # Static row offset when the whole image is one grid step (common case), else from
        # the row-tile grid index.
        row0 = 0 if n_row_tiles == 1 else pl.program_id(1) * tho

        # In-kernel im2col: each distinct space-to-depth spatial offset is a contiguous
        # window of the VMEM-resident input block; loaded once and shared by all scales.
        win_cache = {}

        def window(dr, dc):
            if (dr, dc) not in win_cache:
                win_cache[(dr, dc)] = x_ref[pl.ds(row0 + dr, tho),
                                            pl.ds(dc, wo), :]        # (tho, wo, c4) bf16
            return win_cache[(dr, dc)]

        slab_cache = {}

        def patch_slab(d0, nd):
            if (d0, nd) not in slab_cache:
                cols = [window(d0 + dr, d0 + dc)
                        for dr in range(nd) for dc in range(nd)]
                p3 = cols[0] if len(cols) == 1 else jnp.concatenate(cols, axis=-1)
                slab_cache[(d0, nd)] = p3.reshape(tho * wo, nd * nd * c4)
            return slab_cache[(d0, nd)]

        outs = []
        for meta, w_ref in zip(scale_meta, w_refs):
            patches = patch_slab(meta["d0"], meta["nd"])             # (tm, K_s) bf16
            outs.append(jnp.dot(patches, w_ref[...],
                                preferred_element_type=jnp.float32))  # (tm, Cout_pad_s)
        res = outs[0] if len(outs) == 1 else jnp.concatenate(outs, axis=-1)
        res = res + b_ref[...]                                       # (tm, Cp) f32
        o_ref[...] = res.reshape(tho, wo, res.shape[-1]).astype(o_ref.dtype)

    return kernel


# ------------------------------- JAX wrapper ---------------------------------

def cross_embed_forward(x_nchw, params, kernel_sizes, stride=2, *,
                        compute_dtype=jnp.bfloat16, out_dtype=jnp.float32):
    """Pallas implementation of CrossEmbedLayer.forward (NCHW in / NCHW out)."""
    n, cin, h, w = x_nchw.shape
    s = int(stride)
    ks = [int(k) for k in kernel_sizes]
    assert len(ks) == len(params)
    assert all(k >= s for k in ks), "Conv padding (k - stride)//2 must be non-negative"

    pads = [(k - s) // 2 for k in ks]
    pad_max = max(pads)
    h_outs = [(h + 2 * p - k) // s + 1 for k, p in zip(ks, pads)]
    w_outs = [(w + 2 * p - k) // s + 1 for k, p in zip(ks, pads)]
    assert len(set(h_outs)) == 1 and len(set(w_outs)) == 1, \
        "all scales must share the output spatial size to be concatenated"
    ho, wo = h_outs[0], w_outs[0]

    # Per-scale metadata + weights re-expressed in the space-to-depth basis.
    c4 = s * s * cin
    scale_meta, w_mats, bias_parts = [], [], []
    col_off = 0
    for (wgt, b), k, p in zip(params, ks, pads):
        cout = int(wgt.shape[0])
        shift = pad_max - p                  # extra offset into the max-padded input
        d0 = shift // s                      # first s2d spatial offset used by this scale
        nd = (k - 1 + shift) // s - d0 + 1   # number of s2d offsets per axis
        off = shift % s
        kp = nd * s
        assert kp - k - off >= 0
        cout_pad = _round_up(cout, _LANE)
        # torch (Cout, Cin, kH, kW) -> (kH, kW, Cin, Cout); pad so tap (kh, kw) lands in its
        # parity-folded (dh, ph, dw, pw) slot, then flatten to the in-kernel patch-column
        # order (dh, dw, ph, pw, cin). Zero rows are only the unused parity slots.
        wk = jnp.transpose(wgt, (2, 3, 1, 0)).astype(jnp.float32)
        wk = jnp.pad(wk, ((off, kp - k - off), (off, kp - k - off), (0, 0), (0, 0)))
        wk = wk.reshape(nd, s, nd, s, cin, cout).transpose(0, 2, 1, 3, 4, 5)
        wk = wk.reshape(nd * nd * c4, cout)
        wk = jnp.pad(wk, ((0, 0), (0, cout_pad - cout))).astype(compute_dtype)
        w_mats.append(wk)
        bias_parts.append(jnp.pad(b.astype(jnp.float32), (0, cout_pad - cout)))
        scale_meta.append(dict(d0=d0, nd=nd, cout=cout, cout_pad=cout_pad,
                               col_off=col_off))
        col_off += cout_pad
    cp = col_off
    bias_row = jnp.concatenate(bias_parts).reshape(1, cp)

    # Zero-pad + space-to-depth the input (single pass over x; no k^2 HBM blow-up).
    need_hs = max(ho + m["d0"] + m["nd"] - 1 for m in scale_meta)
    need_ws = max(wo + m["d0"] + m["nd"] - 1 for m in scale_meta)
    hp = _round_up(max(s * need_hs, h + 2 * pad_max), s)
    wp = _round_up(max(s * need_ws, w + 2 * pad_max), s)
    hs, ws = hp // s, wp // s

    x = jnp.transpose(x_nchw, (0, 2, 3, 1)).astype(compute_dtype)
    x = jnp.pad(x, ((0, 0), (pad_max, hp - h - pad_max),
                    (pad_max, wp - w - pad_max), (0, 0)))
    x = x.reshape(n, hs, s, ws, s, cin).transpose(0, 1, 3, 2, 4, 5)
    x = x.reshape(n, hs, ws, c4)

    # Output-row tiling: biggest divisor of Ho whose double-buffered working set fits the
    # per-generation VMEM budget; keep >= 2 grid steps so both v7x TensorCores get work.
    budget = _vmem_budget_bytes()
    out_bytes = jnp.dtype(out_dtype).itemsize
    w_bytes = sum(int(np.prod(wm.shape)) * 2 for wm in w_mats)
    k_max = max(sm["nd"] * sm["nd"] * c4 for sm in scale_meta)

    def fits(tho_):
        tm = tho_ * wo
        fixed = 2 * hs * ws * c4 * 2 + 2 * w_bytes + 2 * cp * 4
        out_buf = 2 * tm * cp * out_bytes
        temps = 2 * tm * (k_max * 2 + cp * 4)       # patch slab + f32 partials (rough)
        return fixed + out_buf + temps <= budget

    divisors = [d for d in range(ho, 0, -1) if ho % d == 0]
    tho = next((d for d in divisors if fits(d)), 1)
    if n == 1 and tho == ho and ho > 1:
        tho = next(d for d in divisors if d < ho)   # >= 2 grid steps for megacore
    n_t = ho // tho

    kernel = _build_kernel(scale_meta, s, tho, wo, c4, n_t)

    in_specs = [pl.BlockSpec((None, hs, ws, c4), lambda i, t: (i, 0, 0, 0))]
    for wm in w_mats:
        # Full-array block + constant index map: DMA'd once, stays VMEM-resident.
        in_specs.append(pl.BlockSpec(wm.shape, lambda i, t: (0, 0)))
    in_specs.append(pl.BlockSpec((1, cp), lambda i, t: (0, 0)))

    out = pl.pallas_call(
        kernel,
        out_shape=jax.ShapeDtypeStruct((n, ho, wo, cp), out_dtype),
        grid=(n, n_t),
        in_specs=in_specs,
        out_specs=pl.BlockSpec((None, tho, wo, cp), lambda i, t: (i, t, 0, 0)),
        compiler_params=pltpu.CompilerParams(
            dimension_semantics=("parallel", "parallel"),
            vmem_limit_bytes=int(budget),
        ),
    )(x, *w_mats, bias_row)

    # Drop the per-scale channel padding (skipped entirely when every Cout_s is already a
    # multiple of 128), then a single NHWC -> NCHW transpose.
    if all(m["cout_pad"] == m["cout"] for m in scale_meta):
        out_c = out
    else:
        out_c = jnp.concatenate(
            [out[..., m["col_off"]:m["col_off"] + m["cout"]] for m in scale_meta],
            axis=-1)
    return jnp.transpose(out_c, (0, 3, 1, 2))


# -------------------------- params + pure-JAX reference ----------------------

def init_cross_embed_params(key, dim_in, dim_out, kernel_sizes):
    """Deterministic init matching nn.Conv2d default (uniform +-1/sqrt(fan_in))."""
    kernel_sizes = sorted(kernel_sizes)
    num_scales = len(kernel_sizes)
    dim_scales = [int(dim_out / 2 ** i) for i in range(1, num_scales)]
    dim_scales = [*dim_scales, dim_out - sum(dim_scales)]
    params = []
    for k, ds in zip(kernel_sizes, dim_scales):
        key, k_w, k_b = jax.random.split(key, 3)
        fan_in = dim_in * k * k
        bound = 1.0 / np.sqrt(fan_in)
        w = jax.random.uniform(k_w, (ds, dim_in, k, k), jnp.float32, -bound, bound)
        b = jax.random.uniform(k_b, (ds,), jnp.float32, -bound, bound)
        params.append((w, b))
    return params, kernel_sizes


def reference_forward(x_nchw, params, kernel_sizes, stride):
    outs = []
    for (w, b), k in zip(params, kernel_sizes):
        pad = (k - stride) // 2
        o = jax.lax.conv_general_dilated(
            x_nchw, w, window_strides=(stride, stride),
            padding=((pad, pad), (pad, pad)),
            dimension_numbers=("NCHW", "OIHW", "NCHW"))
        outs.append(o + b.reshape(1, -1, 1, 1))
    return jnp.concatenate(outs, axis=1)


# ----------------------------------- main ------------------------------------

if __name__ == "__main__":
    dim_in, dim_out = 4, 8
    kernel_sizes_cfg = (4, 2)          # sorted -> (2, 4)
    stride = 2
    N, H, W = 2, 16, 16

    root = jax.random.PRNGKey(0)
    k_x, k_p = jax.random.split(root)
    x = jax.random.normal(k_x, (N, dim_in, H, W), jnp.float32)
    params, kernel_sizes = init_cross_embed_params(k_p, dim_in, dim_out, kernel_sizes_cfg)

    out = jax.block_until_ready(cross_embed_forward(x, params, kernel_sizes, stride))
    ref = jax.block_until_ready(reference_forward(x, params, kernel_sizes, stride))

    assert out.shape == (N, dim_out, H // stride, W // stride), out.shape
    # bf16 inputs/weights with f32 MXU accumulation vs. a pure-f32 reference.
    np.testing.assert_allclose(np.asarray(out), np.asarray(ref), rtol=3e-2, atol=3e-2)
    print("KERNEL_OK")
</pallas_src>

<mosaic_0001>
module attributes {stable_mosaic.version = 11 : i64} {
  func.func @kernel(%arg0: i32, %arg1: i32, %arg2: memref<1x9x9x16xbf16, #tpu.memory_space<vmem>>, %arg3: memref<64x128xbf16, #tpu.memory_space<vmem>>, %arg4: memref<64x128xbf16, #tpu.memory_space<vmem>>, %arg5: memref<1x256xf32, #tpu.memory_space<vmem>>, %arg6: memref<1x8x8x256xf32, #tpu.memory_space<vmem>>) attributes {dimension_semantics = [#tpu.dimension_semantics<parallel>, #tpu.dimension_semantics<parallel>], iteration_bounds = array<i64: 2, 1>, scalar_prefetch = 0 : i64, scratch_operands = 0 : i64, tpu.core_type = #tpu.core_type<tc>, window_params = [{transform_indices = @transform_0, window_bounds = array<i64: 1, 9, 9, 16>}, {pipeline_mode = #tpu.pipeline_mode<synchronous>, transform_indices = @transform_1, window_bounds = array<i64: 64, 128>}, {pipeline_mode = #tpu.pipeline_mode<synchronous>, transform_indices = @transform_2, window_bounds = array<i64: 64, 128>}, {pipeline_mode = #tpu.pipeline_mode<synchronous>, transform_indices = @transform_3, window_bounds = array<i64: 1, 256>}, {transform_indices = @transform_4, window_bounds = array<i64: 1, 8, 8, 256>}]} {
    %c0 = arith.constant 0 : index
    %c0_0 = arith.constant 0 : index
    %c0_1 = arith.constant 0 : index
    %c0_2 = arith.constant 0 : index
    %0 = vector.load %arg2[%c0, %c0_0, %c0_1, %c0_2] : memref<1x9x9x16xbf16, #tpu.memory_space<vmem>>, vector<1x8x8x16xbf16>
    %1 = vector.shape_cast %0 : vector<1x8x8x16xbf16> to vector<8x8x16xbf16>
    %c0_3 = arith.constant 0 : index
    %c0_4 = arith.constant 0 : index
    %c1 = arith.constant 1 : index
    %c0_5 = arith.constant 0 : index
    %2 = vector.load %arg2[%c0_3, %c0_4, %c1, %c0_5] : memref<1x9x9x16xbf16, #tpu.memory_space<vmem>>, vector<1x8x8x16xbf16>
    %3 = vector.shape_cast %2 : vector<1x8x8x16xbf16> to vector<8x8x16xbf16>
    %c0_6 = arith.constant 0 : index
    %c1_7 = arith.constant 1 : index
    %c0_8 = arith.constant 0 : index
    %c0_9 = arith.constant 0 : index
    %4 = vector.load %arg2[%c0_6, %c1_7, %c0_8, %c0_9] : memref<1x9x9x16xbf16, #tpu.memory_space<vmem>>, vector<1x8x8x16xbf16>
    %5 = vector.shape_cast %4 : vector<1x8x8x16xbf16> to vector<8x8x16xbf16>
    %c0_10 = arith.constant 0 : index
    %c1_11 = arith.constant 1 : index
    %c1_12 = arith.constant 1 : index
    %c0_13 = arith.constant 0 : index
    %6 = vector.load %arg2[%c0_10, %c1_11, %c1_12, %c0_13] : memref<1x9x9x16xbf16, #tpu.memory_space<vmem>>, vector<1x8x8x16xbf16>
    %7 = vector.shape_cast %6 : vector<1x8x8x16xbf16> to vector<8x8x16xbf16>
    %8 = tpu.concatenate %1, %3, %5, %7 in 2 : vector<8x8x16xbf16>, vector<8x8x16xbf16>, vector<8x8x16xbf16>, vector<8x8x16xbf16> -> vector<8x8x64xbf16>
    %9 = vector.shape_cast %8 : vector<8x8x64xbf16> to vector<64x64xbf16>
    %c0_14 = arith.constant 0 : index
    %c0_15 = arith.constant 0 : index
    %10 = vector.load %arg3[%c0_14, %c0_15] : memref<64x128xbf16, #tpu.memory_space<vmem>>, vector<64x128xbf16>
    %cst = arith.constant dense<0.000000e+00> : vector<64x128xf32>
    %11 = tpu.matmul %9, %10, %cst {dimension_numbers = #tpu.dot_dimension_numbers<[1], [0], [0], [1], [0, 0, 1, 1], [], []>} : vector<64x64xbf16>, vector<64x128xbf16>, vector<64x128xf32> -> vector<64x128xf32>
    %c0_16 = arith.constant 0 : index
    %c0_17 = arith.constant 0 : index
    %12 = vector.load %arg4[%c0_16, %c0_17] : memref<64x128xbf16, #tpu.memory_space<vmem>>, vector<64x128xbf16>
    %cst_18 = arith.constant dense<0.000000e+00> : vector<64x128xf32>
    %13 = tpu.matmul %9, %12, %cst_18 {dimension_numbers = #tpu.dot_dimension_numbers<[1], [0], [0], [1], [0, 0, 1, 1], [], []>} : vector<64x64xbf16>, vector<64x128xbf16>, vector<64x128xf32> -> vector<64x128xf32>
    %14 = tpu.concatenate %11, %13 in 1 : vector<64x128xf32>, vector<64x128xf32> -> vector<64x256xf32>
    %c0_19 = arith.constant 0 : index
    %c0_20 = arith.constant 0 : index
    %15 = vector.load %arg5[%c0_19, %c0_20] : memref<1x256xf32, #tpu.memory_space<vmem>>, vector<1x256xf32>
    %16 = vector.broadcast %15 : vector<1x256xf32> to vector<64x256xf32>
    %17 = arith.addf %14, %16 : vector<64x256xf32>
    %18 = vector.shape_cast %17 : vector<64x256xf32> to vector<8x8x256xf32>
    %c0_21 = arith.constant 0 : index
    %c0_22 = arith.constant 0 : index
    %c0_23 = arith.constant 0 : index
    %c0_24 = arith.constant 0 : index
    %19 = vector.load %arg6[%c0_21, %c0_22, %c0_23, %c0_24] : memref<1x8x8x256xf32, #tpu.memory_space<vmem>>, vector<1x8x8x256xf32>
    %20 = vector.shape_cast %19 : vector<1x8x8x256xf32> to vector<8x8x256xf32>
    %21 = vector.shape_cast %18 : vector<8x8x256xf32> to vector<1x8x8x256xf32>
    tpu.vector_store %arg6[%c0_21, %c0_22, %c0_23, %c0_24], %21 {strides = array<i32>} : memref<1x8x8x256xf32, #tpu.memory_space<vmem>>, vector<1x8x8x256xf32>,
    return
  }
  func.func @transform_0(%arg0: i32, %arg1: i32) -> (i32, i32, i32, i32) {
    %c0_i32 = arith.constant 0 : i32
    %c0_i32_0 = arith.constant 0 : i32
    %c0_i32_1 = arith.constant 0 : i32
    %c0_i32_2 = arith.constant 0 : i32
    return %arg0, %c0_i32, %c0_i32_0, %c0_i32_1 : i32, i32, i32, i32
  }
  func.func @transform_1(%arg0: i32, %arg1: i32) -> (i32, i32) {
    %c0_i32 = arith.constant 0 : i32
    %c0_i32_0 = arith.constant 0 : i32
    %c0_i32_1 = arith.constant 0 : i32
    return %c0_i32, %c0_i32_0 : i32, i32
  }
  func.func @transform_2(%arg0: i32, %arg1: i32) -> (i32, i32) {
    %c0_i32 = arith.constant 0 : i32
    %c0_i32_0 = arith.constant 0 : i32
    %c0_i32_1 = arith.constant 0 : i32
    return %c0_i32, %c0_i32_0 : i32, i32
  }
  func.func @transform_3(%arg0: i32, %arg1: i32) -> (i32, i32) {
    %c0_i32 = arith.constant 0 : i32
    %c0_i32_0 = arith.constant 0 : i32
    %c0_i32_1 = arith.constant 0 : i32
    return %c0_i32, %c0_i32_0 : i32, i32
  }
  func.func @transform_4(%arg0: i32, %arg1: i32) -> (i32, i32, i32, i32) {
    %c0_i32 = arith.constant 0 : i32
    %c0_i32_0 = arith.constant 0 : i32
    %c0_i32_1 = arith.constant 0 : i32
    return %arg0, %arg1, %c0_i32, %c0_i32_0 : i32, i32, i32, i32
  }
}

</mosaic_0001>

<bundles_post_ra>
// kernel: tpu_custom_call.1
= control target key start
LH: loop header
LB: loop body
LE: loop exit
PB: predicated region body
PF: predicated region fallthrough
CT: control target
= control target key end

     0   :  { %9 = vsyncpa [#allocation3], 0  ;;  %s1537_s0 = inlined_call_operand.vmem [shape: bf16[2,9,9,16], index: 0, kind: input, shape index: {}]   ;;  %s1538_s1 = inlined_call_operand.vmem [shape: bf16[64,128], index: 1, kind: input, shape index: {}]   ;;  %s1539_s2 = inlined_call_operand.vmem [shape: bf16[64,128], index: 2, kind: input, shape index: {}]   ;;  %s1540_s3 = inlined_call_operand.vmem [shape: f32[1,256], index: 3, kind: input, shape index: {}]   ;;  %s1541_s4 = inlined_call_operand.hbm [shape: f32[2,8,8,256], index: 4, kind: output, shape index: {}]  }
   0x1   :  { %11 = vsyncpa [#allocation3 + $0x1], 0  ;;  %s1234_s15 = smov 0   ;;  %s1236_s16 = smov 0  }
   0x2   :  { %s1238_s17 = smov 0   ;;  %s1240_s18 = smov 0  }
   0x3   :  { %s1242_s19 = smov 0   ;;  %s1244_s20 = smov 0  }
   0x4 LB: > { %s913_s21 = sadd.s32 4294967295, %s1202_s20   ;;  %s914_s22 = sadd.s32 4294967294, %s1202_s20   ;;  %s1202_s20 = sphi %s1244_s20, %s17_s20   ;;  %s1198_s19 = sphi %s1242_s19, %s1548_s19   ;;  %s1194_s18 = sphi %s1240_s18, %s1547_s18   ;;  %s1190_s17 = sphi %s1238_s17, %s1546_s17   ;;  %s1186_s16 = sphi %s1236_s16, %s1545_s16   ;;  %s1182_s15 = sphi %s1234_s15, %s1544_s15  }
   0x5   : > { %s29_s23 = sadd.s32 1, %s1198_s19  ;;  %s127_s24 = sadd.s32 1, %s1190_s17 }
   0x6   : > { %p31_p0 = scmp.ge.s32.totalorder %s29_s23, 2  ;;  %p137_p1 = scmp.ne.s32.totalorder %s1190_s17, %s1186_s16 }
   0x7   : > { %p138_p2 = scmp.eq.s32.totalorder %s913_s21, 1  ;;  %p143_p3 = scmp.ne.s32.totalorder %s1186_s16, %s1182_s15 }
   0x8   : > { %s1550_s23 = smov (%p31_p0, %s29_s23), 0  ;;  %p144_p5 = scmp.eq.s32.totalorder %s914_s22, 1 }
   0x9   : > { %p1274_p4 = por %p138_p2, %p137_p1  ;;  %s122_s26 = ssub.s32 %s1198_s19, %s1550_s23 }
   0xa   : > { %p917_p6 = scmp.ge.s32.totalorder %s1202_s20, 1  ;;  %p125_p7 = scmp.eq.s32.totalorder %s122_s26, 0 }
   0xb   : > { %p1281_p8 = por %p144_p5, %p143_p3  ;;  %p179_p9 = scmp.lt.s32.totalorder %s1202_s20, 3 }
   0xc   : > { %s1287_s28 = scalar_select %p125_p7, %s1190_s17, %s127_s24  }
   0xd   : > { %p180_p10 = pnand %p917_p6, %p179_p9 }
   0xe   : > { %p205_p11 = scmp.lt.s32.totalorder (!%p180_p10), %s1194_s18, 1  ;;  %s1204_s12 = smov (!%p180_p10), 32  }
   0xf   : > { %183 = sbr.rel (%p180_p10) target bundleno = 407 (0x197), region = 36  ;;  %s1205_s24 = smov (!%p180_p10), 16  }
  0x10   : > { %s1206_s10 = smov (!%p180_p10), 48   ;;  %s985_s22 = sshll.u32 (!%p180_p10), %s1194_s18, 11 }
  0x11   : > { %s1481_s5 = scalar_lea.hbm (!%p180_p10), %s1541_s4, %s985_s22 }
  0x14   : > { %v1118_v0 = vld [vmem:[%s1538_s1 + $0x18] sm:$0xff]   ;;  %s206_s7 = scalar_select %p205_p11, %s1194_s18, 1  ;;  %v1120_v50 = vld [vmem:[%s1538_s1 + $0x10] sm:$0xff]   ;;  %v1122_v59 = vld [vmem:[%s1538_s1 + $0x8] sm:$0xff]   ;;  %vm493_vm0 = vcmask 130048   ;;  %vm518_vm1 = vcmask 261120  }
  0x15   : > { %v1119_v1 = vld [vmem:[%s1539_s2 + $0x18] sm:$0xff]   ;;  %1002 = vmatprep.subr.bf16.mxu0 %v1118_v0  ;;  %v1121_v55 = vld [vmem:[%s1539_s2 + $0x10] sm:$0xff]   ;;  %vm535_vm2 = vcmask 392192   ;;  %vm604_vm3 = vcmask 523264  }
  0x16   : > { %1018 = vmatprep.subr.bf16.mxu1 %v1119_v1  ;;  %s1034_s8 = smul.u32 72, %s206_s7  ;;  %1003 = vmatpush3.bf16.msra.mxu0 %v1118_v0  ;;  %s1207_s7 = smov [#allocation2]  }
  0x17   : > { %1019 = vmatpush3.bf16.msra.mxu1 %v1119_v1  ;;  %1004 = vmatprep.subr.bf16.mxu0 %v1120_v50  ;;  %v1123_v1 = vld [vmem:[%s1539_s2 + $0x8] sm:$0xff]  }
  0x18   : > { %s1300_s11 = scalar_lea.vmem %s1537_s0, %s1034_s8  ;;  %1020 = vmatprep.subr.bf16.mxu1 %v1121_v55  ;;  %s1130_s8 = sshll.u32 %s1207_s7, 4  ;;  %s1131_s8 = int_to_ptr.vmem [resolvable:$false] %s1130_s8 }
  0x19   : > { %v921_v2 = vld [vmem:[%s1300_s11 + $0x10] sm:$0xf]  ;;  %v929_v3 = vld [vmem:[%s1300_s11 + $0x14] sm:$0x1]  ;;  %v920_v4 = vld [vmem:[%s1300_s11 + $0x8] sm:$0xf] }
  0x1a   : > { %v945_v5 = vcombine.low %v921_v2, %v921_v2  ;;  %v928_v6 = vld [vmem:[%s1300_s11 + $0xc] sm:$0x1]  ;;  %v944_v7 = vcombine.low %v920_v4, %v920_v4  ;;  %v923_v8 = vld [vmem:[%s1300_s11 + $0x20] sm:$0xf]  ;;  %v1307_v9 = vcombine.low %v921_v2, %v929_v3  ;;  %v931_v10 = vld [vmem:[%s1300_s11 + $0x24] sm:$0x1]  ;;  %1005 = vmatpush3.bf16.msra.mxu0 %v1120_v50 }
  0x1b   : > { %v922_v11 = vld [vmem:[%s1300_s11 + $0x18] sm:$0xf]  ;;  %v1312_v12 = vld [vmem:[%s1300_s11 + $0x10] sm:$0xf]  ;;  %v1315_v13 = vcombine.low %v920_v4, %v928_v6  ;;  %v947_v14 = vcombine.low %v923_v8, %v923_v8  ;;  %v930_v15 = vld [vmem:[%s1300_s11 + $0x1c] sm:$0x1]  ;;  %v1329_v23 = vcombine.low %v923_v8, %v931_v10  ;;  %1021 = vmatpush3.bf16.msra.mxu1 %v1121_v55  ;;  %1006 = vmatprep.subr.bf16.mxu0 %v1122_v59 }
  0x1c   : > { %383 = vrot.lane.b32.xlu1 %v945_v5, %s1204_s12  ;;  %381 = vrot.lane.b32.xlu0 %v944_v7, %s1204_s12  ;;  %v946_v16 = vcombine.low %v922_v11, %v922_v11  ;;  %v222_v17 = vld [vmem:[%s1300_s11 + $0x14] sm:$0x1]  ;;  %v1321_v18 = vld [vmem:[%s1300_s11] sm:$0xf]  ;;  %v429_v19 = vshrl.u32 %v1307_v9, 16  ;;  %v431_v32 = vshll.u32 %v1307_v9, 16  ;;  %v1343_v36 = vcombine.low %v922_v11, %v930_v15 }
  0x1d   : > { %v938_v20 = vcombine.low %v1312_v12, %v222_v17  ;;  %v220_v21 = vld [vmem:[%s1300_s11 + $0x4] sm:$0x1]  ;;  %v1327_v22 = vld [vmem:[%s1300_s11 + $0x18] sm:$0xf]  ;;  %v223_v25 = vld [vmem:[%s1300_s11 + $0x1c] sm:$0x1]  ;;  %1022 = vmatprep.subr.bf16.mxu1 %v1123_v1 }
  0x1e   : > { %v936_v24 = vcombine.low %v1321_v18, %v220_v21  ;;  %v1334_v26 = vld [vmem:[%s1300_s11 + $0x8] sm:$0xf]  ;;  %v221_v27 = vld [vmem:[%s1300_s11 + $0xc] sm:$0x1]  ;;  %v939_v30 = vcombine.low %v1327_v22, %v223_v25  ;;  %v424_v33 = vshll.u32 %v1315_v13, 16  ;;  %v422_v41 = vshrl.u32 %v1315_v13, 16  ;;  %1007 = vmatpush3.bf16.msra.mxu0 %v1122_v59 }
  0x1f   : > { %v300_v28 = vshrl.u32 %v938_v20, 16  ;;  %v302_v29 = vshll.u32 %v938_v20, 16  ;;  %v937_v31 = vcombine.low %v1334_v26, %v221_v27  ;;  %v1346_v40 = vld [vmem:[%s1300_s11 + $0x28] sm:$0xf]  ;;  %v225_v45 = vld [vmem:[%s1300_s11 + $0x2c] sm:$0x1]  ;;  %1023 = vmatpush3.bf16.msra.mxu1 %v1123_v1 }
  0x20   : > { %387 = vrot.lane.b32.xlu1 %v947_v14, %s1204_s12  ;;  %385 = vrot.lane.b32.xlu0 %v946_v16, %s1204_s12  ;;  %v286_v34 = vshrl.u32 %v936_v24, 16  ;;  %v288_v35 = vshll.u32 %v936_v24, 16  ;;  %v307_v38 = vshrl.u32 %v939_v30, 16  ;;  %v309_v39 = vshll.u32 %v939_v30, 16  ;;  %v1351_v48 = vld [vmem:[%s1300_s11 + $0x20] sm:$0xf] }
  0x21   : > { %v304_v37 = vrot.slane %v302_v29, 1  ;;  %v293_v43 = vshrl.u32 %v937_v31, 16  ;;  %v295_v44 = vshll.u32 %v937_v31, 16  ;;  %v224_v49 = vld [vmem:[%s1300_s11 + $0x24] sm:$0x1]  ;;  %v433_v53 = vrot.slane %v431_v32, 1 }
  0x22   : > { %v290_v42 = vrot.slane %v288_v35, 1  ;;  %v311_v47 = vrot.slane %v309_v39, 1  ;;  %v426_v54 = vrot.slane %v424_v33, 1  ;;  %v445_v57 = vshll.u32 %v1329_v23, 16  ;;  %v1370_v63 = vld [vmem:[%s1300_s11 + $0x38] sm:$0xf] }
  0x23   : > { %v305_v46 = vor.u32 %v304_v37, %v300_v28  ;;  %v297_v52 = vrot.slane %v295_v44, 1  ;;  %v941_v58 = vcombine.low %v1346_v40, %v225_v45  ;;  %v438_v61 = vshll.u32 %v1343_v36, 16  ;;  %v227_v0 = vld [vmem:[%s1300_s11 + $0x3c] sm:$0x1]  ;;  %v1377_v2 = vld [vmem:[%s1300_s11 + $0x30] sm:$0xf] }
  0x24   : > { %v291_v51 = vor.u32 %v290_v42, %v286_v34  ;;  %v312_v56 = vor.u32 %v311_v47, %v307_v38  ;;  %v940_v62 = vcombine.low %v1351_v48, %v224_v49  ;;  %v226_v3 = vld [vmem:[%s1300_s11 + $0x34] sm:$0x1]  ;;  %v434_v4 = vor.u32 %v433_v53, %v429_v19  ;;  %v1124_v6 = vld [vmem:[%s1538_s1] sm:$0xff]   ;;  %v932_v35 = vld [vmem:[%s1300_s11 + $0x2c] sm:$0x1]  ;;  %s1132_s9 = scalar_lea.vmem %s1131_s8, 4096 }
  0x25   : > { %345 = vrot.lane.b32.xlu1 %v305_v46, %s1205_s24  ;;  %v298_v60 = vor.u32 %v297_v52, %v293_v43  ;;  %v427_v5 = vor.u32 %v426_v54, %v422_v41  ;;  %v443_v7 = vshrl.u32 %v1329_v23, 16  ;;  %v447_v8 = vrot.slane %v445_v57, 1  ;;  %v1125_v11 = vld [vmem:[%s1539_s2] sm:$0xff]   ;;  %1008 = vmatprep.subr.bf16.mxu0 %v1124_v6  ;;  %v933_v34 = vld [vmem:[%s1300_s11 + $0x34] sm:$0x1] }
  0x26   : > { %341 = vrot.lane.b32.xlu0 %v291_v51, %s1205_s24  ;;  %v323_v9 = vshll.u32 %v941_v58, 16  ;;  %v943_v10 = vcombine.low %v1370_v63, %v227_v0  ;;  %v436_v13 = vshrl.u32 %v1343_v36, 16  ;;  %v440_v14 = vrot.slane %v438_v61, 1  ;;  %1024 = vmatprep.subr.bf16.mxu1 %v1125_v11  ;;  %v925_v36 = vld [vmem:[%s1300_s11 + $0x30] sm:$0xf] }
  0x27   : > { %v316_v15 = vshll.u32 %v940_v62, 16  ;;  %v942_v16 = vcombine.low %v1377_v2, %v226_v3  ;;  %v448_v17 = vor.u32 %v447_v8, %v443_v7  ;;  %v321_v19 = vshrl.u32 %v941_v58, 16  ;;  %1009 = vmatpush3.bf16.msra.mxu0 %v1124_v6  ;;  %1025 = vmatpush3.bf16.msra.mxu1 %v1125_v11  ;;  %v924_v39 = vld [vmem:[%s1300_s11 + $0x28] sm:$0xf]  ;;  %v935_v43 = vld [vmem:[%s1300_s11 + $0x44] sm:$0x1] }
  0x28   : > { %v325_v20 = vrot.slane %v323_v9, 1  ;;  %v337_v21 = vshll.u32 %v943_v10, 16  ;;  %v441_v23 = vor.u32 %v440_v14, %v436_v13  ;;  %v314_v24 = vshrl.u32 %v940_v62, 16  ;;  %v934_v44 = vld [vmem:[%s1300_s11 + $0x3c] sm:$0x1] }
  0x29   : > { %347 = vrot.lane.b32.xlu1 %v312_v56, %s1205_s24  ;;  %v318_v25 = vrot.slane %v316_v15, 1  ;;  %v330_v27 = vshll.u32 %v942_v16, 16  ;;  %v335_v29 = vshrl.u32 %v943_v10, 16  ;;  %v328_v32 = vshrl.u32 %v942_v16, 16  ;;  %v927_v45 = vld [vmem:[%s1300_s11 + $0x40] sm:$0xf] }
  0x2a   : > { %343 = vrot.lane.b32.xlu0 %v298_v60, %s1205_s24  ;;  %v326_v28 = vor.u32 %v325_v20, %v321_v19  ;;  %v339_v30 = vrot.slane %v337_v21, 1  ;;  %v957_v38 = vcombine.low %v925_v36, %v933_v34  ;;  %v956_v42 = vcombine.low %v924_v39, %v932_v35  ;;  %v926_v49 = vld [vmem:[%s1300_s11 + $0x38] sm:$0xf]  ;;  %s202_s11 = sand.u32 1, %s1186_s16  }
  0x2b   : > { %v319_v31 = vor.u32 %v318_v25, %v314_v24  ;;  %v332_v33 = vrot.slane %v330_v27, 1  ;;  %v949_v46 = vcombine.low %v925_v36, %v925_v36  ;;  %v959_v47 = vcombine.low %v927_v45, %v935_v43  ;;  %s918_s14 = sshll.u32 %s202_s11, 7  ;;  %s1491_s18 = scalar_lea.sflag [#allocation3], %s202_s11 }
  0x2c   : > { %v340_v37 = vor.u32 %v339_v30, %v335_v29  ;;  %v459_v50 = vshll.u32 %v957_v38, 16  ;;  %v948_v51 = vcombine.low %v924_v39, %v924_v39  ;;  %v958_v52 = vcombine.low %v926_v49, %v934_v44  ;;  %s1462_s21 = scalar_lea.vmem [#allocation2], %s918_s14 }
  0x2d   : > { %479 = vrot.lane.b32.xlu1 %v434_v4, %s1206_s10  ;;  %v333_v41 = vor.u32 %v332_v33, %v328_v32  ;;  %v452_v53 = vshll.u32 %v956_v42, 16  ;;  %v951_v54 = vcombine.low %v927_v45, %v927_v45  ;;  %v457_v55 = vshrl.u32 %v957_v38, 16  ;;  %s840_s26 = sshll.u32 %s1462_s21, 4  ;;  %s1485_s26 = int_to_ptr.vmem [resolvable:$true] %s840_s26 }
  0x2e   : > { %477 = vrot.lane.b32.xlu0 %v427_v5, %s1206_s10  ;;  %v461_v56 = vrot.slane %v459_v50, 1  ;;  %v473_v57 = vshll.u32 %v959_v47, 16  ;;  %v950_v58 = vcombine.low %v926_v49, %v926_v49  ;;  %v450_v59 = vshrl.u32 %v956_v42, 16  ;;  %s1126_s6 = scalar_lea.vmem %s1485_s26, 2048  ;;  %p1133_p1 = scmp.lt.s32.totalorder %s1485_s26, %s1131_s8 }
  0x2f   : > { %v454_v60 = vrot.slane %v452_v53, 1  ;;  %v466_v61 = vshll.u32 %v958_v52, 16  ;;  %v471_v0 = vshrl.u32 %v959_v47, 16  ;;  %v464_v4 = vshrl.u32 %v958_v52, 16  ;;  %p1127_p12 = scmp.ne.s32.totalorder %s1485_s26, %s1126_s6  ;;  %p1134_p2 = scmp.lt.s32.totalorder %s1132_s9, %s1126_s6 }
  0x30   : > { %v462_v62 = vor.u32 %v461_v56, %v457_v55  ;;  %v475_v1 = vrot.slane %v473_v57, 1 }
  0x31   : > { %483 = vrot.lane.b32.xlu1 %v448_v17, %s1206_s10  ;;  %v455_v3 = vor.u32 %v454_v60, %v450_v59  ;;  %v468_v5 = vrot.slane %v466_v61, 1  ;;  %p1128_p13 = pnand %p1127_p12, %p1274_p4  ;;  %p1135_p3 = por %p1134_p2, %p1133_p1 }
  0x32   : > { %481 = vrot.lane.b32.xlu0 %v441_v23, %s1206_s10  ;;  %v476_v6 = vor.u32 %v475_v1, %v471_v0 }
  0x33   : > { %v469_v7 = vor.u32 %v468_v5, %v464_v4  ;;  %p1129_p0 = pneg %p1128_p13 }
  0x35   : > { %351 = vrot.lane.b32.xlu1 %v326_v28, %s1205_s24  ;;  %p1136_p5 = pnand %p1135_p3, %p1129_p0 }
  0x36   : > { %349 = vrot.lane.b32.xlu0 %v319_v31, %s1205_s24 }
  0x39   : > { %355 = vrot.lane.b32.xlu1 %v340_v37, %s1205_s24 }
  0x3a   : > { %353 = vrot.lane.b32.xlu0 %v333_v41, %s1205_s24 }
  0x3d   : > { %391 = vrot.lane.b32.xlu1 %v949_v46, %s1204_s12 }
  0x3e   : > { %389 = vrot.lane.b32.xlu0 %v948_v51, %s1204_s12 }
  0x41   : > { %395 = vrot.lane.b32.xlu1 %v951_v54, %s1204_s12 }
  0x42   : > { %393 = vrot.lane.b32.xlu0 %v950_v58, %s1204_s12 }
  0x45   : > { %487 = vrot.lane.b32.xlu1 %v462_v62, %s1206_s10  ;;  %v779_v62 = vld [vmem:[%s1540_s3] sm:$0x3] }
  0x46   : > { %485 = vrot.lane.b32.xlu0 %v455_v3, %s1206_s10 }
  0x49   : > { %491 = vrot.lane.b32.xlu1 %v476_v6, %s1206_s10 }
  0x4a   : > { %489 = vrot.lane.b32.xlu0 %v469_v7, %s1206_s10 }
  0x8e   : > { %v384_v8 = vpop.permute.xlu1 %383  ;;  %v382_v9 = vpop.permute.xlu0 %381 }
  0x92   : > { %v388_v10 = vpop.permute.xlu1 %387  ;;  %v386_v11 = vpop.permute.xlu0 %385 }
  0x97   : > { %v346_v13 = vpop.permute.xlu1 %345 }
  0x98   : > { %v342_v14 = vpop.permute.xlu0 %341  ;;  %v502_v28 = vsel %vm493_vm0, %v1312_v12, %v346_v13 }
  0x99   : > { %v496_v17 = vsel %vm493_vm0, %v1321_v18, %v342_v14 }
  0x9a   : > { %v520_v25 = vsel %vm518_vm1, %v496_v17, %v382_v9 }
  0x9b   : > { %v348_v15 = vpop.permute.xlu1 %347 }
  0x9c   : > { %v344_v16 = vpop.permute.xlu0 %343  ;;  %v505_v23 = vsel %vm493_vm0, %v1327_v22, %v348_v15  ;;  %v524_v22 = vsel %vm518_vm1, %v502_v28, %v386_v11 }
  0x9d   : > { %v499_v19 = vsel %vm493_vm0, %v1334_v26, %v344_v16  ;;  %v526_v29 = vsel %vm518_vm1, %v505_v23, %v388_v10 }
  0x9e   : > { %v522_v21 = vsel %vm518_vm1, %v499_v19, %v384_v8 }
  0x9f   : > { %v480_v20 = vpop.permute.xlu1 %479 }
  0xa0   : > { %v539_v24 = vsel %vm535_vm2, %v522_v21, %v480_v20  ;;  %v478_v27 = vpop.permute.xlu0 %477 }
  0xa1   : > { %v537_v18 = vsel %vm535_vm2, %v520_v25, %v478_v27 }
  0xa2   : > { %v960_v26 = vcombine.low %v537_v18, %v539_v24 }
  0xa3   : > { %v484_v30 = vpop.permute.xlu1 %483 }
  0xa4   : > { %v543_v31 = vsel %vm535_vm2, %v526_v29, %v484_v30  ;;  %1010 = vmatprep.mubr.msk.bf16.mxu0 %vm604_vm3, %v960_v26  ;;  %1026 = vmatprep.mubr.msk.bf16.mxu1 %vm604_vm3, %v960_v26  ;;  %v482_v32 = vpop.permute.xlu0 %481 }
  0xa5   : > { %v541_v33 = vsel %vm535_vm2, %v524_v22, %v482_v32 }
  0xa6   : > { %v961_v34 = vcombine.low %v541_v33, %v543_v31 }
  0xa7   : > { %v352_v12 = vpop.permute.xlu1 %351 }
  0xa8   : > { %1011 = vmatmul.mubr.msk.bf16.vlgmr.msra.gmra.mxu0 %vm604_vm3, %v961_v34  ;;  %1027 = vmatmul.mubr.msk.bf16.vlgmr.msra.gmra.mxu1 %vm604_vm3, %v961_v34  ;;  %v350_v35 = vpop.permute.xlu0 %349  ;;  %v511_v43 = vsel %vm493_vm0, %v1346_v40, %v352_v12 }
  0xa9   : > { %v508_v44 = vsel %vm493_vm0, %v1351_v48, %v350_v35 }
  0xab   : > { %v356_v36 = vpop.permute.xlu1 %355 }
  0xac   : > { %v354_v37 = vpop.permute.xlu0 %353  ;;  %v517_v52 = vsel %vm493_vm0, %v1370_v63, %v356_v36 }
  0xad   : > { %v514_v40 = vsel %vm493_vm0, %v1377_v2, %v354_v37  ;;  %v781_v2 = vlaneseq }
  0xaf   : > { %v392_v38 = vpop.permute.xlu1 %391  ;;  %v782_v59 = vshrl.u32 %v781_v2, 7 }
  0xb0   : > { %v390_v39 = vpop.permute.xlu0 %389  ;;  %v530_v45 = vsel %vm518_vm1, %v511_v43, %v392_v38 }
  0xb1   : > { %v528_v47 = vsel %vm518_vm1, %v508_v44, %v390_v39  ;;  %v783_v60 = vsub.s32 0, %v782_v59  ;;  %v787_v61 = vsub.s32 1, %v782_v59 }
  0xb3   : > { %v396_v41 = vpop.permute.xlu1 %395  ;;  %v784_v0 = vrot.slane %v779_v62, %v783_v60  ;;  %v788_v1 = vrot.slane %v779_v62, %v787_v61 }
  0xb4   : > { %v394_v42 = vpop.permute.xlu0 %393  ;;  %v534_v48 = vsel %vm518_vm1, %v517_v52, %v396_v41 }
  0xb5   : > { %v532_v55 = vsel %vm518_vm1, %v514_v40, %v394_v42 }
  0xb7   : > { %v488_v46 = vpop.permute.xlu1 %487 }
  0xb8   : > { %v547_v49 = vsel %vm535_vm2, %v530_v45, %v488_v46  ;;  %v486_v50 = vpop.permute.xlu0 %485 }
  0xb9   : > { %v545_v51 = vsel %vm535_vm2, %v528_v47, %v486_v50 }
  0xba   : > { %v962_v53 = vcombine.low %v545_v51, %v547_v49 }
  0xbb   : > { %v492_v54 = vpop.permute.xlu1 %491 }
  0xbc   : > { %v551_v56 = vsel %vm535_vm2, %v534_v48, %v492_v54  ;;  %1014 = vmatprep.mubr.msk.bf16.mxu0 %vm604_vm3, %v962_v53  ;;  %1030 = vmatprep.mubr.msk.bf16.mxu1 %vm604_vm3, %v962_v53  ;;  %v490_v57 = vpop.permute.xlu0 %489 }
  0xbd   : > { %v549_v63 = vsel %vm535_vm2, %v532_v55, %v490_v57 }
  0xbe   : > { %v963_v58 = vcombine.low %v549_v63, %v551_v56 }
  0xc0   : > { %1015 = vmatmul.mubr.msk.bf16.gmra.mxu0 %vm604_vm3, %v963_v58  ;;  %1031 = vmatmul.mubr.msk.bf16.gmra.mxu1 %vm604_vm3, %v963_v58 }
 0x168   : > { %v1012_v3 = vpop.f32.mrf.mxu0  ;;  %v1028_v4 = vpop.f32.mrf.mxu1 }
 0x169   : > { %v795_v5 = vadd.f32 %v1012_v3, %v784_v0  ;;  %v796_v6 = vadd.f32 %v1028_v4, %v788_v1 }
 0x16a   : > { %v651_v7 = vpop.f32.mrf.mxu0  ;;  %v748_v8 = vpop.f32.mrf.mxu1 }
 0x16b   : > { %811 = vst [vmem:[%s1462_s21 + $0x20] sm:$0xff] %v795_v5  ;;  %812 = vst [vmem:[%s1462_s21 + $0x28] sm:$0xff] %v796_v6  ;;  %v791_v9 = vadd.f32 %v784_v0, %v651_v7  ;;  %v792_v10 = vadd.f32 %v788_v1, %v748_v8 }
 0x16c   : > { %v1013_v11 = vpop.f32.mrf.mxu0  ;;  %v1029_v13 = vpop.f32.mrf.mxu1 }
 0x16d   : > { %807 = vst [vmem:[%s1462_s21] sm:$0xff] %v791_v9  ;;  %808 = vst [vmem:[%s1462_s21 + $0x8] sm:$0xff] %v792_v10  ;;  %v797_v14 = vadd.f32 %v1013_v11, %v784_v0  ;;  %v798_v15 = vadd.f32 %v1029_v13, %v788_v1 }
 0x16e   : > { %v654_v16 = vpop.f32.mrf.mxu0  ;;  %v751_v17 = vpop.f32.mrf.mxu1 }
 0x16f   : > { %813 = vst [vmem:[%s1462_s21 + $0x30] sm:$0xff] %v797_v14  ;;  %814 = vst [vmem:[%s1462_s21 + $0x38] sm:$0xff] %v798_v15  ;;  %v793_v19 = vadd.f32 %v784_v0, %v654_v16  ;;  %v794_v20 = vadd.f32 %v788_v1, %v751_v17 }
 0x171   : > { %809 = vst [vmem:[%s1462_s21 + $0x10] sm:$0xff] %v793_v19  ;;  %810 = vst [vmem:[%s1462_s21 + $0x18] sm:$0xff] %v794_v20 }
 0x180   : > { %v1016_v21 = vpop.f32.mrf.mxu0  ;;  %v1032_v23 = vpop.f32.mrf.mxu1 }
 0x181   : > { %v803_v24 = vadd.f32 %v1016_v21, %v784_v0  ;;  %v804_v25 = vadd.f32 %v1032_v23, %v788_v1 }
 0x182   : > { %v667_v27 = vpop.f32.mrf.mxu0  ;;  %v764_v28 = vpop.f32.mrf.mxu1 }
 0x183   : > { %819 = vst [vmem:[%s1462_s21 + $0x60] sm:$0xff] %v803_v24  ;;  %820 = vst [vmem:[%s1462_s21 + $0x68] sm:$0xff] %v804_v25  ;;  %v799_v18 = vadd.f32 %v784_v0, %v667_v27  ;;  %v800_v26 = vadd.f32 %v788_v1, %v764_v28 }
 0x184   : > { %v1017_v29 = vpop.f32.mrf.mxu0  ;;  %v1033_v30 = vpop.f32.mrf.mxu1 }
 0x185   : > { %815 = vst [vmem:[%s1462_s21 + $0x40] sm:$0xff] %v799_v18  ;;  %816 = vst [vmem:[%s1462_s21 + $0x48] sm:$0xff] %v800_v26  ;;  %v805_v31 = vadd.f32 %v1017_v29, %v784_v0  ;;  %v806_v22 = vadd.f32 %v1033_v30, %v788_v1 }
 0x186   : > { %v670_v32 = vpop.f32.mrf.mxu0  ;;  %v767_v33 = vpop.f32.mrf.mxu1 }
 0x187   : > { %821 = vst [vmem:[%s1462_s21 + $0x70] sm:$0xff] %v805_v31  ;;  %822 = vst [vmem:[%s1462_s21 + $0x78] sm:$0xff] %v806_v22  ;;  %v801_v34 = vadd.f32 %v784_v0, %v670_v32  ;;  %v802_v12 = vadd.f32 %v788_v1, %v767_v33 }
 0x189   : > { %817 = vst [vmem:[%s1462_s21 + $0x50] sm:$0xff] %v801_v34  ;;  %818 = vst [vmem:[%s1462_s21 + $0x58] sm:$0xff] %v802_v12 }
 0x18a   : > { %1139 = shalt.err (!%p1136_p5)
}
 0x18b   : > { %s1140_s10 = scalar_lea.hbm %s1481_s5, 2048  ;;  %s1144_s13 = scalar_lea.hbm %s1541_s4, 4096 }
 0x18c   : > { %p1141_p6 = scmp.ne.s32.totalorder %s1481_s5, %s1140_s10  ;;  %p1145_p10 = scmp.lt.s32.totalorder %s1481_s5, %s1541_s4 }
 0x18d   : > { %p1146_p11 = scmp.lt.s32.totalorder %s1144_s13, %s1140_s10 }
 0x18e   : > { %p1142_p7 = pnand %p1141_p6, %p1274_p4 }
 0x18f   : > { %p1147_p12 = por %p1146_p11, %p1145_p10 }
 0x190   : > { %p1143_p9 = pneg %p1142_p7 }
 0x192   : > { %p1148_p13 = pnand %p1147_p12, %p1143_p9 }
 0x194   : > { %1151 = shalt.err (!%p1148_p13)
}
 0x195   : > { %s1208_s22 = smov 256  }
 0x196   : > { %1035 = dma.vmem_to_hbm [thread:$0]  (%p1274_p4), %s1485_s26, 2048, %s1481_s5, %s1491_s18, %s1208_s22, %s1208_s22, %s1205_s24  }
 0x197 PF: > { %p1041_p0 = scmp.ge.s32.totalorder %s1202_s20, 2  ;;  %s855_s29 = sand.u32 1, %s1182_s15  }
 0x198   : > { %s856_s30 = scalar_lea.sflag [#allocation3], %s855_s29 }
 0x199   : > { %p1038_p1 = pnand %p1041_p0, %p1281_p8 }
 0x19b   : > { %p1039_p2 = pneg %p1038_p1 }
 0x19d   : > { %1177 = dma.done.wait (%p1039_p2), %s856_s30, 2048  }
 0x19e   : > { %1179 = vsyncadd (%p1039_p2), %s856_s30, 4294965248  ;;  %s17_s20 = sadd.s32 1, %s1202_s20   ;;  %s1544_s15 = smov %s1186_s16 }
 0x19f   : > { %p14_p3 = scmp.ge.s32.totalorder %s17_s20, 4   ;;  %s1545_s16 = smov %s1190_s17 }
 0x1a0   : > { %s1546_s17 = smov %s1287_s28  ;;  %s1547_s18 = smov %s1198_s19 }
 0x1a1   : > { %s1548_s19 = smov %s1550_s23  ;;  %16 = sbr.rel (!%p14_p3) target bundleno = 4 (0x4), region = 72 }
 0x1a6   :  { %861 = vsyncpa [#allocation3], 1 }
 0x1a7   :  { %863 = vsyncpa [#allocation3 + $0x1], 1 }

</bundles_post_ra>
